<compile_context>
chip_gen: v7x
topology: tpu7x:2x2x1
jax: 0.10.0
libtpu: 0.0.40
codegen_flags: <defaults>
</compile_context>

<pallas_src>
import functools

import jax
import jax.numpy as jnp
from jax import lax
from jax.experimental import pallas as pl
from jax.experimental.pallas import tpu as pltpu


def _attention_head_kernel(*refs, scale, has_mask):
    if has_mask:
        x_ref, mask_ref, wqkv_ref, wproj_ref, bproj_ref, o_ref, acc_ref = refs
    else:
        x_ref, wqkv_ref, wproj_ref, bproj_ref, o_ref, acc_ref = refs
        mask_ref = None

    h = pl.program_id(1)
    num_h = pl.num_programs(1)
    D = wproj_ref.shape[1]

    x = x_ref[0]                    # (N, C)
    w_qkv_h = wqkv_ref[0]           # (C, 3D)  columns = [q_h | k_h | v_h]
    w_proj_h = wproj_ref[0]         # (D, C)

    # Per-head QKV projection (qkv_bias=False). f32 accumulation on the MXU,
    # then cast back to the input dtype so the attention matmuls run with
    # bf16 operands when the model is bf16.
    qkv = jnp.dot(x, w_qkv_h, preferred_element_type=jnp.float32)
    qkv = qkv.astype(x.dtype)       # (N, 3D)
    q = qkv[:, 0 * D:1 * D]
    k = qkv[:, 1 * D:2 * D]
    v = qkv[:, 2 * D:3 * D]

    # attn = q @ k^T * scale — contract on D without materializing k^T.
    attn = lax.dot_general(q, k, (((1,), (1,)), ((), ())),
                           preferred_element_type=jnp.float32) * scale  # (N, N)

    if has_mask:
        # Same semantics as the PyTorch forward: attn += mask * -100000.0,
        # broadcast over heads.
        attn = attn + mask_ref[0].astype(jnp.float32) * (-100000.0)

    # Numerically-stable softmax; elementwise math stays in f32.
    m = jnp.max(attn, axis=-1, keepdims=True)
    p = jnp.exp(attn - m)
    denom = jnp.sum(p, axis=-1, keepdims=True)
    p = p * pl.reciprocal(denom, approx=True)
    # attn_drop is identity (p=0.0 / inference).

    # Per-head context and its contribution to the output projection.
    ctx = jnp.dot(p.astype(v.dtype), v, preferred_element_type=jnp.float32)   # (N, D)
    contrib = jnp.dot(ctx.astype(w_proj_h.dtype), w_proj_h,
                      preferred_element_type=jnp.float32)                     # (N, C)

    @pl.when(h == 0)
    def _init():
        # Start the accumulator from the projection bias.
        acc_ref[...] = jnp.broadcast_to(bproj_ref[...].astype(jnp.float32),
                                        acc_ref.shape)

    acc_ref[...] += contrib

    @pl.when(h == num_h - 1)
    def _finalize():
        # proj_drop is identity (p=0.0 / inference).
        o_ref[0] = acc_ref[...].astype(o_ref.dtype)


def attention_pallas(x, w_qkv, w_proj, b_proj, mask=None, *, num_heads, scale):
    """x: (B, N, C); w_qkv: (C, 3C) input-major; w_proj: (C, C); b_proj: (1, C).

    mask (optional): (B, N, N), added as mask * -1e5 broadcast over heads.
    """
    B, N, C = x.shape
    H = num_heads
    D = C // H
    has_mask = mask is not None

    # Head-major weight relayout (wrapper-side, one-time; avoids in-kernel
    # transposes / XLU relayout):
    #   w_qkv (C, 3C), column layout [s, h, d]  ->  (H, C, 3D)
    #   w_proj (C, C), row layout    [h, d]     ->  (H, D, C)
    wqkv_h = w_qkv.reshape(C, 3, H, D).transpose(2, 0, 1, 3).reshape(H, C, 3 * D)
    wproj_h = w_proj.reshape(H, D, C)

    kernel = functools.partial(_attention_head_kernel,
                               scale=scale, has_mask=has_mask)

    in_specs = [pl.BlockSpec((1, N, C), lambda b, h: (b, 0, 0))]        # x
    operands = [x]
    if has_mask:
        in_specs.append(pl.BlockSpec((1, N, N), lambda b, h: (b, 0, 0)))  # mask
        operands.append(mask)
    in_specs += [
        pl.BlockSpec((1, C, 3 * D), lambda b, h: (h, 0, 0)),            # w_qkv head h
        pl.BlockSpec((1, D, C), lambda b, h: (h, 0, 0)),                # w_proj head h
        pl.BlockSpec((1, C), lambda b, h: (0, 0)),                      # b_proj
    ]
    operands += [wqkv_h, wproj_h, b_proj]

    # Explicit VMEM budget (matters most on v7x's 64 MiB physical VMEM):
    # double-buffered blocks + resident accumulator, with generous headroom,
    # never below the default scoped limit so small shapes stay unchanged.
    itemsize = jnp.dtype(x.dtype).itemsize
    per_step_elems = (N * C + (N * N if has_mask else 0)
                      + C * 3 * D + D * C + C + N * C)
    vmem_limit = int(min(64 * 2 ** 20,
                         max(32 * 2 ** 20, 8 * per_step_elems * itemsize)))

    return pl.pallas_call(
        kernel,
        out_shape=jax.ShapeDtypeStruct((B, N, C), x.dtype),
        grid_spec=pltpu.PrefetchScalarGridSpec(
            num_scalar_prefetch=0,
            grid=(B, H),                         # head (reduction) axis last
            in_specs=in_specs,
            out_specs=pl.BlockSpec((1, N, C), lambda b, h: (b, 0, 0)),
            scratch_shapes=[pltpu.VMEM((N, C), jnp.float32)],
        ),
        compiler_params=pltpu.CompilerParams(
            dimension_semantics=("parallel", "arbitrary"),
            vmem_limit_bytes=vmem_limit,
        ),
    )(*operands)


def attention_reference(x, w_qkv, w_proj, b_proj, mask, *, num_heads, scale):
    """Pure-JAX reference mirroring the PyTorch forward."""
    B, N, C = x.shape
    H, D = num_heads, C // num_heads
    qkv = (x @ w_qkv).reshape(B, N, 3, H, D).transpose(2, 0, 3, 1, 4)
    q, k, v = qkv[0], qkv[1], qkv[2]                       # (B, H, N, D)
    attn = jnp.einsum("bhnd,bhmd->bhnm", q, k) * scale
    if mask is not None:
        attn = attn + (mask * -100000.0)[:, None, :, :]
    attn = jax.nn.softmax(attn, axis=-1)
    out = jnp.einsum("bhnm,bhmd->bhnd", attn, v).transpose(0, 2, 1, 3)
    out = out.reshape(B, N, C)
    return out @ w_proj + b_proj[0]


if __name__ == "__main__":
    # Small shapes consistent with the module: B=2, N=8 tokens, dim=32, 8 heads.
    B, N, C = 2, 8, 32
    num_heads = 8
    head_dim = C // num_heads
    scale = head_dim ** (-0.5)

    key = jax.random.PRNGKey(0)
    kx, kq, kp, kb, km = jax.random.split(key, 5)

    x = jax.random.normal(kx, (B, N, C), dtype=jnp.float32)
    # Deterministic synthetic parameters (qkv has no bias; proj has bias).
    w_qkv = jax.random.normal(kq, (C, 3 * C), dtype=jnp.float32) * 0.05
    w_proj = jax.random.normal(kp, (C, C), dtype=jnp.float32) * 0.05
    b_proj = jax.random.normal(kb, (1, C), dtype=jnp.float32) * 0.05
    # Optional additive mask (semantics: attn += mask * -1e5).
    mask = (jax.random.uniform(km, (B, N, N)) > 0.8).astype(jnp.float32)

    # Masked path.
    out = attention_pallas(x, w_qkv, w_proj, b_proj, mask,
                           num_heads=num_heads, scale=scale)
    out = jax.block_until_ready(out)
    ref = attention_reference(x, w_qkv, w_proj, b_proj, mask,
                              num_heads=num_heads, scale=scale)
    assert out.shape == (B, N, C)
    assert jnp.allclose(out, ref, atol=1e-3, rtol=1e-3), "mismatch vs reference"

    # mask=None path (specialized kernel variant: no mask traffic at all).
    out_nomask = jax.block_until_ready(
        attention_pallas(x, w_qkv, w_proj, b_proj, None,
                         num_heads=num_heads, scale=scale))
    ref_nomask = attention_reference(x, w_qkv, w_proj, b_proj, None,
                                     num_heads=num_heads, scale=scale)
    assert jnp.allclose(out_nomask, ref_nomask, atol=1e-3, rtol=1e-3)

    # TODO(synk): attn_drop / proj_drop are identity (p=0.0 / inference); no
    # dropout RNG is implemented in-kernel.
    print("KERNEL_OK")
</pallas_src>

<mosaic_0001>
module attributes {stable_mosaic.version = 11 : i64} {
  func.func @_attention_head_kernel(%arg0: i32, %arg1: i32, %arg2: memref<1x8x32xf32, #tpu.memory_space<vmem>>, %arg3: memref<1x8x8xf32, #tpu.memory_space<vmem>>, %arg4: memref<1x32x12xf32, #tpu.memory_space<vmem>>, %arg5: memref<1x4x32xf32, #tpu.memory_space<vmem>>, %arg6: memref<1x32xf32, #tpu.memory_space<vmem>>, %arg7: memref<1x8x32xf32, #tpu.memory_space<vmem>>, %arg8: memref<8x32xf32, #tpu.memory_space<vmem>>) attributes {dimension_semantics = [#tpu.dimension_semantics<parallel>, #tpu.dimension_semantics<arbitrary>], iteration_bounds = array<i64: 2, 8>, scalar_prefetch = 0 : i64, scratch_operands = 1 : i64, tpu.core_type = #tpu.core_type<tc>, window_params = [{transform_indices = @transform_0, window_bounds = array<i64: 1, 8, 32>}, {transform_indices = @transform_1, window_bounds = array<i64: 1, 8, 8>}, {transform_indices = @transform_2, window_bounds = array<i64: 1, 32, 12>}, {transform_indices = @transform_3, window_bounds = array<i64: 1, 4, 32>}, {pipeline_mode = #tpu.pipeline_mode<synchronous>, transform_indices = @transform_4, window_bounds = array<i64: 1, 32>}, {transform_indices = @transform_5, window_bounds = array<i64: 1, 8, 32>}]} {
    %c0 = arith.constant 0 : index
    %c0_0 = arith.constant 0 : index
    %c0_1 = arith.constant 0 : index
    %0 = vector.load %arg2[%c0, %c0_0, %c0_1] : memref<1x8x32xf32, #tpu.memory_space<vmem>>, vector<1x8x32xf32>
    %1 = vector.shape_cast %0 : vector<1x8x32xf32> to vector<8x32xf32>
    %c0_2 = arith.constant 0 : index
    %c0_3 = arith.constant 0 : index
    %c0_4 = arith.constant 0 : index
    %2 = vector.load %arg4[%c0_2, %c0_3, %c0_4] : memref<1x32x12xf32, #tpu.memory_space<vmem>>, vector<1x32x12xf32>
    %3 = vector.shape_cast %2 : vector<1x32x12xf32> to vector<32x12xf32>
    %c0_5 = arith.constant 0 : index
    %c0_6 = arith.constant 0 : index
    %c0_7 = arith.constant 0 : index
    %4 = vector.load %arg5[%c0_5, %c0_6, %c0_7] : memref<1x4x32xf32, #tpu.memory_space<vmem>>, vector<1x4x32xf32>
    %5 = vector.shape_cast %4 : vector<1x4x32xf32> to vector<4x32xf32>
    %cst = arith.constant dense<0.000000e+00> : vector<8x12xf32>
    %6 = tpu.matmul %1, %3, %cst {dimension_numbers = #tpu.dot_dimension_numbers<[1], [0], [0], [1], [0, 0, 1, 1], [], []>} : vector<8x32xf32>, vector<32x12xf32>, vector<8x12xf32> -> vector<8x12xf32>
    %7 = vector.extract_strided_slice %6 {offsets = [0, 0], sizes = [8, 4], strides = [1, 1]} : vector<8x12xf32> to vector<8x4xf32>
    %8 = vector.extract_strided_slice %6 {offsets = [0, 4], sizes = [8, 4], strides = [1, 1]} : vector<8x12xf32> to vector<8x4xf32>
    %9 = vector.extract_strided_slice %6 {offsets = [0, 8], sizes = [8, 4], strides = [1, 1]} : vector<8x12xf32> to vector<8x4xf32>
    %cst_8 = arith.constant dense<0.000000e+00> : vector<8x8xf32>
    %10 = tpu.matmul %7, %8, %cst_8 {dimension_numbers = #tpu.dot_dimension_numbers<[1], [1], [0], [0], [0, 0, 1, 0], [], []>} : vector<8x4xf32>, vector<8x4xf32>, vector<8x8xf32> -> vector<8x8xf32>
    %cst_9 = arith.constant 5.000000e-01 : f32
    %11 = vector.broadcast %cst_9 : f32 to vector<8x8xf32>
    %12 = arith.mulf %10, %11 : vector<8x8xf32>
    %c0_10 = arith.constant 0 : index
    %c0_11 = arith.constant 0 : index
    %c0_12 = arith.constant 0 : index
    %13 = vector.load %arg3[%c0_10, %c0_11, %c0_12] : memref<1x8x8xf32, #tpu.memory_space<vmem>>, vector<1x8x8xf32>
    %14 = vector.shape_cast %13 : vector<1x8x8xf32> to vector<8x8xf32>
    %cst_13 = arith.constant -1.000000e+05 : f32
    %15 = vector.broadcast %cst_13 : f32 to vector<8x8xf32>
    %16 = arith.mulf %14, %15 : vector<8x8xf32>
    %17 = arith.addf %12, %16 : vector<8x8xf32>
    %cst_14 = arith.constant dense<0xFF800000> : vector<8xf32>
    %18 = vector.multi_reduction <maximumf>, %17, %cst_14 [1] : vector<8x8xf32> to vector<8xf32>
    %19 = vector.shape_cast %18 : vector<8xf32> to vector<8x1xf32>
    %20 = vector.broadcast %19 : vector<8x1xf32> to vector<8x8xf32>
    %21 = arith.subf %17, %20 : vector<8x8xf32>
    %22 = math.exp %21 : vector<8x8xf32>
    %cst_15 = arith.constant dense<0.000000e+00> : vector<8xf32>
    %23 = vector.multi_reduction <add>, %22, %cst_15 [1] : vector<8x8xf32> to vector<8xf32>
    %24 = vector.shape_cast %23 : vector<8xf32> to vector<8x1xf32>
    %25 = tpu.reciprocal %24 {approx = true} : vector<8x1xf32> -> vector<8x1xf32>
    %26 = vector.broadcast %25 : vector<8x1xf32> to vector<8x8xf32>
    %27 = arith.mulf %22, %26 : vector<8x8xf32>
    %cst_16 = arith.constant dense<0.000000e+00> : vector<8x4xf32>
    %28 = tpu.matmul %27, %9, %cst_16 {dimension_numbers = #tpu.dot_dimension_numbers<[1], [0], [0], [1], [0, 0, 1, 1], [], []>} : vector<8x8xf32>, vector<8x4xf32>, vector<8x4xf32> -> vector<8x4xf32>
    %cst_17 = arith.constant dense<0.000000e+00> : vector<8x32xf32>
    %29 = tpu.matmul %28, %5, %cst_17 {dimension_numbers = #tpu.dot_dimension_numbers<[1], [0], [0], [1], [0, 0, 1, 1], [], []>} : vector<8x4xf32>, vector<4x32xf32>, vector<8x32xf32> -> vector<8x32xf32>
    %c0_i32 = arith.constant 0 : i32
    %30 = arith.cmpi eq, %arg1, %c0_i32 : i32
    %31 = arith.extui %30 : i1 to i32
    %c0_i32_18 = arith.constant 0 : i32
    %32 = arith.cmpi ne, %31, %c0_i32_18 : i32
    scf.if %32 {
      %c0_24 = arith.constant 0 : index
      %c0_25 = arith.constant 0 : index
      %39 = vector.load %arg6[%c0_24, %c0_25] : memref<1x32xf32, #tpu.memory_space<vmem>>, vector<1x32xf32>
      %40 = vector.shape_cast %39 : vector<1x32xf32> to vector<1x32xf32>
      %41 = vector.broadcast %40 : vector<1x32xf32> to vector<8x32xf32>
      %c0_26 = arith.constant 0 : index
      %c0_27 = arith.constant 0 : index
      %42 = vector.load %arg8[%c0_26, %c0_27] : memref<8x32xf32, #tpu.memory_space<vmem>>, vector<8x32xf32>
      tpu.vector_store %arg8[%c0_26, %c0_27], %41 {strides = array<i32>} : memref<8x32xf32, #tpu.memory_space<vmem>>, vector<8x32xf32>,
    } else {
    }
    %c0_19 = arith.constant 0 : index
    %c0_20 = arith.constant 0 : index
    %33 = vector.load %arg8[%c0_19, %c0_20] : memref<8x32xf32, #tpu.memory_space<vmem>>, vector<8x32xf32>
    %34 = arith.addf %33, %29 : vector<8x32xf32>
    %c0_21 = arith.constant 0 : index
    %c0_22 = arith.constant 0 : index
    %35 = vector.load %arg8[%c0_21, %c0_22] : memref<8x32xf32, #tpu.memory_space<vmem>>, vector<8x32xf32>
    tpu.vector_store %arg8[%c0_21, %c0_22], %34 {strides = array<i32>} : memref<8x32xf32, #tpu.memory_space<vmem>>, vector<8x32xf32>,
    %c7_i32 = arith.constant 7 : i32
    %36 = arith.cmpi eq, %arg1, %c7_i32 : i32
    %37 = arith.extui %36 : i1 to i32
    %c0_i32_23 = arith.constant 0 : i32
    %38 = arith.cmpi ne, %37, %c0_i32_23 : i32
    scf.if %38 {
      %c0_24 = arith.constant 0 : index
      %c0_25 = arith.constant 0 : index
      %39 = vector.load %arg8[%c0_24, %c0_25] : memref<8x32xf32, #tpu.memory_space<vmem>>, vector<8x32xf32>
      %c0_26 = arith.constant 0 : index
      %c0_27 = arith.constant 0 : index
      %c0_28 = arith.constant 0 : index
      %40 = vector.load %arg7[%c0_26, %c0_27, %c0_28] : memref<1x8x32xf32, #tpu.memory_space<vmem>>, vector<1x8x32xf32>
      %41 = vector.shape_cast %40 : vector<1x8x32xf32> to vector<8x32xf32>
      %42 = vector.shape_cast %39 : vector<8x32xf32> to vector<1x8x32xf32>
      tpu.vector_store %arg7[%c0_26, %c0_27, %c0_28], %42 {strides = array<i32>} : memref<1x8x32xf32, #tpu.memory_space<vmem>>, vector<1x8x32xf32>,
    } else {
    }
    return
  }
  func.func @transform_0(%arg0: i32, %arg1: i32) -> (i32, i32, i32) {
    %c0_i32 = arith.constant 0 : i32
    %c0_i32_0 = arith.constant 0 : i32
    %c0_i32_1 = arith.constant 0 : i32
    return %arg0, %c0_i32, %c0_i32_0 : i32, i32, i32
  }
  func.func @transform_1(%arg0: i32, %arg1: i32) -> (i32, i32, i32) {
    %c0_i32 = arith.constant 0 : i32
    %c0_i32_0 = arith.constant 0 : i32
    %c0_i32_1 = arith.constant 0 : i32
    return %arg0, %c0_i32, %c0_i32_0 : i32, i32, i32
  }
  func.func @transform_2(%arg0: i32, %arg1: i32) -> (i32, i32, i32) {
    %c0_i32 = arith.constant 0 : i32
    %c0_i32_0 = arith.constant 0 : i32
    %c0_i32_1 = arith.constant 0 : i32
    return %arg1, %c0_i32, %c0_i32_0 : i32, i32, i32
  }
  func.func @transform_3(%arg0: i32, %arg1: i32) -> (i32, i32, i32) {
    %c0_i32 = arith.constant 0 : i32
    %c0_i32_0 = arith.constant 0 : i32
    %c0_i32_1 = arith.constant 0 : i32
    return %arg1, %c0_i32, %c0_i32_0 : i32, i32, i32
  }
  func.func @transform_4(%arg0: i32, %arg1: i32) -> (i32, i32) {
    %c0_i32 = arith.constant 0 : i32
    %c0_i32_0 = arith.constant 0 : i32
    %c0_i32_1 = arith.constant 0 : i32
    return %c0_i32, %c0_i32_0 : i32, i32
  }
  func.func @transform_5(%arg0: i32, %arg1: i32) -> (i32, i32, i32) {
    %c0_i32 = arith.constant 0 : i32
    %c0_i32_0 = arith.constant 0 : i32
    %c0_i32_1 = arith.constant 0 : i32
    return %arg0, %c0_i32, %c0_i32_0 : i32, i32, i32
  }
}

</mosaic_0001>

<bundles_post_ra>
// kernel: tpu_custom_call.1
= control target key start
LH: loop header
LB: loop body
LE: loop exit
PB: predicated region body
PF: predicated region fallthrough
CT: control target
= control target key end

     0   :  { %10 = vsyncpa [#allocation4], 0  ;;  %s1204_s0 = inlined_call_operand.vmem [shape: f32[2,8,32], index: 0, kind: input, shape index: {}]   ;;  %s1205_s1 = inlined_call_operand.vmem [shape: f32[2,8,8], index: 1, kind: input, shape index: {}]   ;;  %s1206_s2 = inlined_call_operand.vmem [shape: f32[8,32,12], index: 2, kind: input, shape index: {}]   ;;  %s1207_s3 = inlined_call_operand.vmem [shape: f32[8,4,32], index: 3, kind: input, shape index: {}]   ;;  %s1208_s4 = inlined_call_operand.vmem [shape: f32[1,32], index: 4, kind: input, shape index: {}]   ;;  %s1209_s5 = inlined_call_operand.hbm [shape: f32[2,8,32], index: 5, kind: output, shape index: {}]  }
   0x1   :  { %12 = vsyncpa [#allocation4 + $0x1], 0  ;;  %s1034_s18 = smov 0   ;;  %s1036_s19 = smov 0  }
   0x2   :  { %s1038_s20 = smov 0   ;;  %s1040_s21 = smov 0  }
   0x3   :  { %s1042_s22 = smov 0   ;;  %s1044_s23 = smov 0  }
   0x4   :  { %s1046_s24 = smov 0   ;;  %s1048_s25 = smov 0  }
   0x5 LB: > { %s754_s26 = sadd.s32 4294967295, %s996_s25   ;;  %s755_s27 = sadd.s32 4294967294, %s996_s25   ;;  %s996_s25 = sphi %s1048_s25, %s18_s25   ;;  %s992_s24 = sphi %s1046_s24, %s1218_s24   ;;  %s988_s23 = sphi %s1044_s23, %s1217_s23   ;;  %s984_s22 = sphi %s1042_s22, %s1216_s22   ;;  %s980_s21 = sphi %s1040_s21, %s1215_s21   ;;  %s976_s20 = sphi %s1038_s20, %s1214_s20   ;;  %s972_s19 = sphi %s1036_s19, %s1213_s19   ;;  %s968_s18 = sphi %s1034_s18, %s1212_s18  }
   0x6   : > { %s27_s28 = sadd.s32 1, %s988_s23  ;;  %s30_s29 = sadd.s32 1, %s992_s24 }
   0x7   : > { %p28_p0 = scmp.ge.s32.totalorder %s27_s28, 8  ;;  %p172_p1 = scmp.ne.s32.totalorder %s976_s20, %s972_s19 }
   0x8   : > { %p173_p2 = scmp.eq.s32.totalorder %s754_s26, 15  ;;  %p178_p4 = scmp.ne.s32.totalorder %s972_s19, %s968_s18 }
   0x9   : > { %s1220_s28 = smov (%p28_p0, %s27_s28), 0  ;;  %s1222_s29 = smov (!%p28_p0, %s30_s29), %s992_s24 }
   0xa   : > { %p1083_p3 = por %p173_p2, %p172_p1  ;;  %p32_p5 = scmp.ge.s32.totalorder %s1222_s29, 2 }
   0xb   : > { %p179_p6 = scmp.eq.s32.totalorder %s755_s27, 15  ;;  %p758_p7 = scmp.ge.s32.totalorder %s996_s25, 1 }
   0xc   : > { %p229_p8 = scmp.lt.s32.totalorder %s996_s25, 17  ;;  %s1224_s29 = smov (%p32_p5, %s1222_s29), 0 }
   0xd   : > { %p1093_p9 = por %p179_p6, %p178_p4  ;;  %s159_s7 = ssub.s32 %s992_s24, %s1224_s29 }
   0xe   : > { %p230_p10 = pnand %p758_p7, %p229_p8  ;;  %s162_s8 = sadd.s32 1, %s976_s20 }
   0xf   : > { %p160_p11 = scmp.eq.s32.totalorder %s159_s7, 0  ;;  %s266_s10 = sand.u32 (!%p230_p10), 1, %s972_s19   ;;  %v998_v0 = vmov (!%p230_p10), 0.0|0.0   ;;  %vm999_vm0 = vmmov (!%p230_p10), 0   ;;  %v1000_v1 = vmov (!%p230_p10), 0.0   ;;  %vm292_vm1 = vcmask (!%p230_p10), 261120  }
  0x10   : > { %233 = sbr.rel (%p230_p10) target bundleno = 1358 (0x54e), region = 40  ;;  %p277_p12 = scmp.lt.s32.totalorder (!%p230_p10), %s980_s21, 7  ;;  %816 = vmatprep.subr.bf16.mxu0 (!%p230_p10), %v998_v0  ;;  %798 = vmatprep.mubr.msk.f32.mxu0 (!%p230_p10), %vm999_vm0, %v1000_v1  ;;  %vm369_vm2 = vcmask (!%p230_p10), 31744   ;;  %vm448_vm3 = vcmask (!%p230_p10), 64512   ;;  %vm539_vm4 = vcmask (!%p230_p10), 1043456  }
  0x11   : > { %s1101_s9 = scalar_select %p160_p11, %s976_s20, %s162_s8  }
  0x12   : > { %s1107_s11 = sshll.u32 (!%p230_p10), %s266_s10, 3  ;;  %p269_p13 = scmp.lt.s32.totalorder (!%p230_p10), %s984_s22, 1  ;;  %801 = vmatprep.subr.mxu1 (!%p230_p10), %v1000_v1  ;;  %803 = vmatprep.mubr.msk.f32.mxu1 (!%p230_p10), %vm999_vm0, %v1000_v1 }
  0x13   : > { %p771_p0 = scmp.ne.s32.totalorder (!%p230_p10), %s980_s21, 0 }
  0x17   : > { %s1113_s12 = scalar_select %p277_p12, %s980_s21, 7 }
  0x18   : > { %s1116_s13 = scalar_select %p269_p13, %s984_s22, 1 }
  0x19   : > { %s778_s14 = sshll.u32 %s1113_s12, 5  ;;  %v772_v33 = vld [vmem:[%s1208_s4] ss:$0 sm:$0xff] (!%p771_p0) }
  0x1a   : > { %s281_s17 = scalar_lea.vmem %s1206_s2, %s778_s14  ;;  %s760_s26 = sshll.u32 %s1116_s13, 3  ;;  %624 = vst.msk [vmem:[#allocation2] sm:$0xff] (!%p771_p0), %vm292_vm1, %v772_v33 }
  0x1b   : > { %v287_v2 = vld [vmem:[%s281_s17] sm:$0xff]  ;;  %v288_v3 = vld [vmem:[%s281_s17 + $0x8] sm:$0xff]  ;;  %v289_v4 = vld [vmem:[%s281_s17 + $0x10] sm:$0xff]  ;;  %s272_s8 = scalar_lea.vmem %s1204_s0, %s760_s26  ;;  %s1001_s14 = smov 124  }
  0x1c   : > { %v817_v5 = vpack.c.bf16 %v288_v3, %v287_v2  ;;  %v290_v6 = vld [vmem:[%s281_s17 + $0x18] sm:$0xff]  ;;  %v286_v8 = vld [vmem:[%s272_s8] sm:$0xff]  ;;  %s276_s16 = scalar_lea.vmem %s1205_s1, %s760_s26  ;;  %s1002_s17 = smov 120  }
  0x1d   : > { %v820_v7 = vpack.c.bf16 %v290_v6, %v289_v4  ;;  %v445_v12 = vld [vmem:[%s276_s16] sm:$0xff]  ;;  %s764_s26 = sshll.u32 %s1113_s12, 2  ;;  %s268_s12 = scalar_lea.vmem [#allocation3], %s1107_s11 }
  0x1e   : > { %818 = vmatpush3.bf16.msra.mxu0 %v817_v5  ;;  %v446_v13 = vmul.f32 -100000.0, %v445_v12  ;;  %s285_s8 = scalar_lea.vmem %s1207_s3, %s764_s26 }
  0x1f   : > { %819 = vmatprep.subr.bf16.mxu0 %v998_v0  ;;  %v291_v24 = vld [vmem:[%s285_s8] sm:$0xf] }
  0x22   : > { %821 = vmatpush3.bf16.msra.mxu0 %v820_v7 }
  0x23   : > { %811 = vmatprep.subr.mxu0 %v1000_v1 }
  0x25   : > { %799 = vmatmul.mubr.msk.f32.vlgmr.msra.gmra.mrb[0].mxu0 %vm292_vm1, %v286_v8 }
  0x26   : > { %813 = vmatprep.mubr.msk.f32.mxu0 %vm999_vm0, %v1000_v1  ;;  %812 = vmatpush3.msk.msra.mxu0 %vm539_vm4, %v291_v24 }
  0xf8   : > { %v362_v9 = vpop.f32.mrb[0].mxu0 }
  0xf9   : > { %367 = vrot.lane.b32.xlu0 %v362_v9, %s1001_s14  ;;  %v800_v10 = vpop.f32.mrb[1].mxu0 }
 0x16b   : > { %v368_v11 = vpop.permute.xlu0 %367 }
 0x16c   : > { %802 = vmatpush3.xpose.msk.msra.mxu1 %vm369_vm2, %v368_v11 }
 0x16d   : > { %806 = vmatprep.subr.mxu1 %v1000_v1 }
 0x16f   : > { %804 = vmatmul.mubr.msk.f32.vlgmr.msra.gmra.mrb[0].mxu1 %vm369_vm2, %v362_v9 }
 0x170   : > { %808 = vmatprep.mubr.msk.f32.mxu1 %vm999_vm0, %v1000_v1 }
 0x242   : > { %v440_v14 = vpop.f32.mrb[0].mxu1 }
 0x243   : > { %v444_v15 = vmul.f32 0.5, %v440_v14  ;;  %v805_v16 = vpop.f32.mrb[1].mxu1 }
 0x245   : > { %v447_v17 = vadd.f32 %v446_v13, %v444_v15 }
 0x247   : > { %v449_v18 = vsel %vm448_vm3, %v447_v17, -inf }
 0x248   : > { %450 = vmax.xlane.f32.xlu0 %v449_v18 }
 0x2d5   : > { %v451_v19 = vpop.xlane.xlu0 %450 }
 0x2d6   : > { %v452_v20 = vsub.f32 %v447_v17, %v451_v19 }
 0x2d8   : > { %v453_v21 = vmul.f32 1.442695, %v452_v20 }
 0x2da   : > { %898 = vpow2.f32 %v453_v21 }
 0x2e4   : > { %v899_v22 = vpop.eup %898 }
 0x2e5   : > { %v455_v23 = vsel %vm448_vm3, %v899_v22, 0.0 }
 0x2e6   : > { %456 = vadd.xlane.f32.xlu1 %v455_v23 }
 0x2f7   : > { %460 = vrot.lane.b32.xlu1 %v362_v9, %s1002_s17 }
 0x373   : > { %v457_v25 = vpop.xlane.xlu1 %456 }
 0x374   : > { %900 = vrcp.f32 %v457_v25 }
 0x377   : > { %v461_v26 = vpop.permute.xlu1 %460 }
 0x378   : > { %807 = vmatpush3.msra.mxu1 %v461_v26 }
 0x37e   : > { %v901_v27 = vpop.eup %900 }
 0x37f   : > { %v459_v28 = vmul.f32 %v901_v27, %v899_v22 }
 0x381   : > { %809 = vmatmul.mubr.msk.f32.vlgmr.msra.gmra.mrb[2].mxu1 %vm448_vm3, %v459_v28 }
 0x454   : > { %v532_v29 = vpop.f32.mrb[2].mxu1 }
 0x455   : > { %v810_v30 = vpop.f32.mrb[3].mxu1  ;;  %814 = vmatmul.mubr.msk.f32.vlgmr.msra.gmra.mrb[2].mxu0 %vm369_vm2, %v532_v29 }
 0x523   : > { %616 = sbr.rel (%p771_p0) target bundleno = 1322 (0x52a), region = 44 }
 0x528   : > { %v609_v31 = vpop.f32.mrb[2].mxu0 }
 0x529   : > { %v815_v32 = vpop.f32.mrb[3].mxu0 }
 0x52a PF: > { %v625_v34 = vld [vmem:[#allocation2] sm:$0xff]  ;;  %p773_p1 = scmp.ne.s32.totalorder %s980_s21, 7 }
 0x52b   : > { %v626_v35 = vadd.f32 %v625_v34, %v609_v31 }
 0x52c   : > { %631 = sbr.rel (%p773_p1) target bundleno = 1334 (0x536), region = 48 }
 0x52d   : > { %627 = vst.msk [vmem:[#allocation2] sm:$0xff] %vm292_vm1, %v626_v35 }
 0x534   : > { %v632_v36 = vld [vmem:[#allocation2] sm:$0xff] }
 0x535   : > { %633 = vst.msk [vmem:[%s268_s12] sm:$0xff] %vm292_vm1, %v632_v36 }
 0x536 PF: > { %s775_s11 = sshll.u32 %s984_s22, 7  ;;  %s648_s26 = sshll.u32 %s268_s12, 4  ;;  %s649_s26 = int_to_ptr.vmem [resolvable:$true] %s648_s26 }
 0x537   : > { %s1155_s17 = scalar_lea.hbm %s1209_s5, %s775_s11  ;;  %s635_s27 = scalar_lea.sflag [#allocation4], %s266_s10 }
 0x538   : > { %s902_s7 = scalar_lea.vmem %s649_s26, 128  ;;  %s1003_s21 = smov [#allocation3]  }
 0x539   : > { %p903_p2 = scmp.ne.s32.totalorder %s649_s26, %s902_s7  ;;  %s906_s8 = sshll.u32 %s1003_s21, 4  ;;  %s907_s8 = int_to_ptr.vmem [resolvable:$false] %s906_s8 }
 0x53a   : > { %s908_s14 = scalar_lea.vmem %s907_s8, 256  ;;  %p909_p6 = scmp.lt.s32.totalorder %s649_s26, %s907_s8 }
 0x53b   : > { %p904_p4 = pnand %p903_p2, %p1083_p3  ;;  %p910_p7 = scmp.lt.s32.totalorder %s908_s14, %s902_s7 }
 0x53d   : > { %p905_p5 = pneg %p904_p4  ;;  %p911_p8 = por %p910_p7, %p909_p6 }
 0x53f   : > { %p912_p10 = pnand %p911_p8, %p905_p5 }
 0x541   : > { %915 = shalt.err (!%p912_p10)
}
 0x542   : > { %s916_s22 = scalar_lea.hbm %s1155_s17, 128  ;;  %s920_s13 = scalar_lea.hbm %s1209_s5, 256 }
 0x543   : > { %p917_p11 = scmp.ne.s32.totalorder %s1155_s17, %s916_s22  ;;  %p921_p0 = scmp.lt.u32.totalorder %s1155_s17, %s1209_s5 }
 0x544   : > { %p922_p1 = scmp.lt.u32.totalorder %s920_s13, %s916_s22  ;;  %p924_p4 = scmp.lt.u32.totalorder %s916_s22, %s1155_s17 }
 0x545   : > { %p918_p12 = pnand %p917_p11, %p1083_p3 }
 0x546   : > { %p923_p2 = por %p922_p1, %p921_p0 }
 0x547   : > { %p919_p13 = pneg %p918_p12 }
 0x548   : > { %p925_p5 = por %p924_p4, %p923_p2 }
 0x54a   : > { %p926_p6 = pnand %p925_p5, %p919_p13 }
 0x54c   : > { %929 = shalt.err (!%p926_p6)
}
 0x54d   : > { %822 = dma.vmem_to_hbm [thread:$0]  (%p1083_p3), %s649_s26, 128, %s1155_s17, %s635_s27  }
 0x54e PF: > { %p828_p7 = scmp.ge.s32.totalorder %s996_s25, 2  ;;  %s660_s16 = sand.u32 1, %s968_s18  }
 0x54f   : > { %s661_s7 = scalar_lea.sflag [#allocation4], %s660_s16 }
 0x550   : > { %p825_p8 = pnand %p828_p7, %p1093_p9 }
 0x552   : > { %963 = dma.done.wait (!%p825_p8), %s661_s7, 128  }
 0x553   : > { %965 = vsyncadd (!%p825_p8), %s661_s7, 4294967168  ;;  %s18_s25 = sadd.s32 1, %s996_s25   ;;  %s1212_s18 = smov %s972_s19 }
 0x554   : > { %p15_p10 = scmp.ge.s32.totalorder %s18_s25, 18   ;;  %s1213_s19 = smov %s976_s20 }
 0x555   : > { %s1214_s20 = smov %s1101_s9  ;;  %s1215_s21 = smov %s988_s23 }
 0x556   : > { %s1216_s22 = smov %s992_s24  ;;  %s1217_s23 = smov %s1220_s28 }
 0x557   : > { %s1218_s24 = smov %s1224_s29  ;;  %17 = sbr.rel (!%p15_p10) target bundleno = 5 (0x5), region = 92 }
 0x55e   :  { %666 = vsyncpa [#allocation4], 1 }
 0x55f   :  { %668 = vsyncpa [#allocation4 + $0x1], 1 }

</bundles_post_ra>
